<compile_context>
chip_gen: v7x
topology: tpu7x:2x2x1
jax: 0.10.0
libtpu: 0.0.40
codegen_flags: <defaults>
</compile_context>

<pallas_src>
import jax
import jax.numpy as jnp
from jax.experimental import pallas as pl
from jax.experimental.pallas import tpu as pltpu

HIDDEN = 400


def _round_up(n, m):
    return ((n + m - 1) // m) * m


def _mlp_kernel(x_ref, w1_ref, b1_ref, w2_ref, b2_ref, w3_ref, b3_ref, o_ref):
    # fc1: bf16 x bf16 -> f32 on the MXU, bias + ReLU on the VPU.
    h1 = jnp.dot(x_ref[...], w1_ref[...], preferred_element_type=jnp.float32)
    h1 = jnp.maximum(h1 + b1_ref[...], 0.0)

    # dropout(p=0.5) -> identity in eval mode.
    # TODO(synk): training-mode dropout (Bernoulli mask via pltpu.prng_*) not emitted.

    # fc2: cast activations back to bf16 for native-rate MXU, keep f32 accumulate.
    h2 = jnp.dot(h1.astype(w2_ref.dtype), w2_ref[...],
                 preferred_element_type=jnp.float32)
    h2 = jnp.maximum(h2 + b2_ref[...], 0.0)

    # fc3_mean: output width is 1, so skip the MXU entirely -> VPU multiply +
    # XLU lane reduction against the (1, HIDDEN) weight row, then an XLU
    # transpose to a lane-dense (1, bb) row for an unmasked store.
    w3_row = w3_ref[...].astype(jnp.float32)                   # (1, HIDDEN)
    col = jnp.sum(h2 * w3_row, axis=-1, keepdims=True)         # (bb, 1)
    o_ref[...] = (jnp.transpose(col) + b3_ref[...]).astype(o_ref.dtype)  # (1, bb)


def student_mean_only(x, params, *, block_b=512):
    """x: (B, input_size) float. params: dict of w1,b1,w2,b2,w3,b3 (f32).

    Weights/activations are cast to bf16 for DMA + MXU efficiency; all matmul
    accumulation stays f32.
    """
    B, F = x.shape

    # bf16 weight/activation casts (halves the dominant weight DMA).
    x_bf = x.astype(jnp.bfloat16)
    w1 = params["w1"].astype(jnp.bfloat16)                      # (F, H)
    w2 = params["w2"].astype(jnp.bfloat16)                      # (H, H)
    w3 = params["w3"].reshape(1, HIDDEN).astype(jnp.bfloat16)   # (1, H) row for VPU reduce
    b1 = params["b1"].reshape(1, HIDDEN).astype(jnp.float32)    # (1, H)
    b2 = params["b2"].reshape(1, HIDDEN).astype(jnp.float32)    # (1, H)
    b3 = params["b3"].reshape(1, 1).astype(jnp.float32)         # (1, 1)

    # Batch tile: one block covering round_up(B, 16) rows when it fits in
    # block_b, otherwise a multiple of 128 (lane-dense output blocks, full MXU
    # M dim on v6e/v7x, sublane-packed bf16 rows).
    b16 = _round_up(max(B, 1), 16)
    if b16 <= block_b:
        bb = b16
    else:
        bb = _round_up(min(block_b, b16), 128)
    B_pad = _round_up(B, bb)
    n_blocks = B_pad // bb
    if B_pad != B:
        x_bf = jnp.pad(x_bf, ((0, B_pad - B), (0, 0)))

    def const_spec(shape):
        # Weights/biases: whole array is one block, same block every grid step
        # -> stays resident in VMEM; single buffer since the index never moves.
        nd = len(shape)
        return pl.BlockSpec(shape, lambda i: (0,) * nd,
                            pipeline_mode=pl.Buffered(1))

    # Only shard the batch grid across v7x's two TensorCores when the extra
    # per-TC resident-weight DMA (~410 KB padded w2) is worth it.
    use_parallel = (n_blocks > 1) and (B_pad >= 1024)
    semantics = ("parallel",) if use_parallel else ("arbitrary",)

    flops = 2 * B_pad * (F * HIDDEN + HIDDEN * HIDDEN + HIDDEN)
    bytes_accessed = (
        x_bf.size * 2
        + w1.size * 2 + w2.size * 2 + w3.size * 2
        + (b1.size + b2.size + b3.size) * 4
        + B_pad * 4
    )

    out = pl.pallas_call(
        _mlp_kernel,
        out_shape=jax.ShapeDtypeStruct((1, B_pad), jnp.float32),
        grid=(n_blocks,),
        in_specs=[
            pl.BlockSpec((bb, F), lambda i: (i, 0)),   # x: streamed per batch tile
            const_spec(w1.shape), const_spec(b1.shape),
            const_spec(w2.shape), const_spec(b2.shape),
            const_spec(w3.shape), const_spec(b3.shape),
        ],
        out_specs=pl.BlockSpec((1, bb), lambda i: (0, i)),   # lane-dense output row
        compiler_params=pltpu.CompilerParams(dimension_semantics=semantics),
        cost_estimate=pl.CostEstimate(
            flops=flops, transcendentals=0, bytes_accessed=bytes_accessed),
    )(x_bf, w1, b1, w2, b2, w3, b3)

    return out[0, :B].reshape(B, 1)


def init_params(key, input_size):
    """PyTorch nn.Linear-style init: U(-1/sqrt(fan_in), 1/sqrt(fan_in))."""
    ks = jax.random.split(key, 6)

    def linear(kw, kb, fan_in, fan_out):
        bound = 1.0 / jnp.sqrt(jnp.asarray(fan_in, jnp.float32))
        w = jax.random.uniform(kw, (fan_in, fan_out), jnp.float32, -bound, bound)
        b = jax.random.uniform(kb, (1, fan_out), jnp.float32, -bound, bound)
        return w, b

    w1, b1 = linear(ks[0], ks[1], input_size, HIDDEN)
    w2, b2 = linear(ks[2], ks[3], HIDDEN, HIDDEN)
    w3, b3 = linear(ks[4], ks[5], HIDDEN, 1)
    return {"w1": w1, "b1": b1, "w2": w2, "b2": b2, "w3": w3, "b3": b3}


if __name__ == "__main__":
    key = jax.random.PRNGKey(0)
    k_x, k_p = jax.random.split(key)

    batch = 8
    input_size = 16  # small synthetic feature count (telemonitoring-style tabular input)

    x = jax.random.normal(k_x, (batch, input_size), dtype=jnp.float32)
    params = init_params(k_p, input_size)

    out = student_mean_only(x, params)
    out = jax.block_until_ready(out)

    # Pure-JAX reference that mirrors the kernel's bf16-in / f32-accumulate math.
    w1q = params["w1"].astype(jnp.bfloat16).astype(jnp.float32)
    w2q = params["w2"].astype(jnp.bfloat16).astype(jnp.float32)
    w3q = params["w3"].astype(jnp.bfloat16).astype(jnp.float32)
    xq = x.astype(jnp.bfloat16).astype(jnp.float32)
    h1 = jnp.maximum(xq @ w1q + params["b1"], 0.0)
    h1 = h1.astype(jnp.bfloat16).astype(jnp.float32)
    h2 = jnp.maximum(h1 @ w2q + params["b2"], 0.0)
    ref = h2 @ w3q + params["b3"]

    assert out.shape == (batch, 1)
    assert jnp.allclose(out, ref, atol=2e-3, rtol=2e-3), (
        f"max abs err = {jnp.max(jnp.abs(out - ref))}")

    print("KERNEL_OK")
</pallas_src>

<mosaic_0001>
module attributes {stable_mosaic.version = 11 : i64} {
  func.func @_mlp_kernel(%arg0: i32, %arg1: memref<16x16xbf16, #tpu.memory_space<vmem>>, %arg2: memref<16x400xbf16, #tpu.memory_space<vmem>>, %arg3: memref<1x400xf32, #tpu.memory_space<vmem>>, %arg4: memref<400x400xbf16, #tpu.memory_space<vmem>>, %arg5: memref<1x400xf32, #tpu.memory_space<vmem>>, %arg6: memref<1x400xbf16, #tpu.memory_space<vmem>>, %arg7: memref<1x1xf32, #tpu.memory_space<vmem>>, %arg8: memref<1x16xf32, #tpu.memory_space<vmem>>) attributes {dimension_semantics = [#tpu.dimension_semantics<arbitrary>], iteration_bounds = array<i64: 1>, scalar_prefetch = 0 : i64, scratch_operands = 0 : i64, tpu.core_type = #tpu.core_type<tc>, window_params = [{transform_indices = @transform_0, window_bounds = array<i64: 16, 16>}, {pipeline_mode = #tpu.pipeline_mode<synchronous>, transform_indices = @transform_1, window_bounds = array<i64: 16, 400>}, {pipeline_mode = #tpu.pipeline_mode<synchronous>, transform_indices = @transform_2, window_bounds = array<i64: 1, 400>}, {pipeline_mode = #tpu.pipeline_mode<synchronous>, transform_indices = @transform_3, window_bounds = array<i64: 400, 400>}, {pipeline_mode = #tpu.pipeline_mode<synchronous>, transform_indices = @transform_4, window_bounds = array<i64: 1, 400>}, {pipeline_mode = #tpu.pipeline_mode<synchronous>, transform_indices = @transform_5, window_bounds = array<i64: 1, 400>}, {pipeline_mode = #tpu.pipeline_mode<synchronous>, transform_indices = @transform_6, window_bounds = array<i64: 1, 1>}, {transform_indices = @transform_7, window_bounds = array<i64: 1, 16>}]} {
    %c0 = arith.constant 0 : index
    %c0_0 = arith.constant 0 : index
    %0 = vector.load %arg1[%c0, %c0_0] : memref<16x16xbf16, #tpu.memory_space<vmem>>, vector<16x16xbf16>
    %c0_1 = arith.constant 0 : index
    %c0_2 = arith.constant 0 : index
    %1 = vector.load %arg2[%c0_1, %c0_2] : memref<16x400xbf16, #tpu.memory_space<vmem>>, vector<16x400xbf16>
    %cst = arith.constant dense<0.000000e+00> : vector<16x400xf32>
    %2 = tpu.matmul %0, %1, %cst {dimension_numbers = #tpu.dot_dimension_numbers<[1], [0], [0], [1], [0, 0, 1, 1], [], []>} : vector<16x16xbf16>, vector<16x400xbf16>, vector<16x400xf32> -> vector<16x400xf32>
    %c0_3 = arith.constant 0 : index
    %c0_4 = arith.constant 0 : index
    %3 = vector.load %arg3[%c0_3, %c0_4] : memref<1x400xf32, #tpu.memory_space<vmem>>, vector<1x400xf32>
    %4 = vector.broadcast %3 : vector<1x400xf32> to vector<16x400xf32>
    %5 = arith.addf %2, %4 : vector<16x400xf32>
    %cst_5 = arith.constant 0.000000e+00 : f32
    %6 = vector.broadcast %cst_5 : f32 to vector<16x400xf32>
    %7 = arith.maximumf %5, %6 : vector<16x400xf32>
    %8 = arith.truncf %7 : vector<16x400xf32> to vector<16x400xbf16>
    %c0_6 = arith.constant 0 : index
    %c0_7 = arith.constant 0 : index
    %9 = vector.load %arg4[%c0_6, %c0_7] : memref<400x400xbf16, #tpu.memory_space<vmem>>, vector<400x400xbf16>
    %cst_8 = arith.constant dense<0.000000e+00> : vector<16x400xf32>
    %10 = tpu.matmul %8, %9, %cst_8 {dimension_numbers = #tpu.dot_dimension_numbers<[1], [0], [0], [1], [0, 0, 1, 1], [], []>} : vector<16x400xbf16>, vector<400x400xbf16>, vector<16x400xf32> -> vector<16x400xf32>
    %c0_9 = arith.constant 0 : index
    %c0_10 = arith.constant 0 : index
    %11 = vector.load %arg5[%c0_9, %c0_10] : memref<1x400xf32, #tpu.memory_space<vmem>>, vector<1x400xf32>
    %12 = vector.broadcast %11 : vector<1x400xf32> to vector<16x400xf32>
    %13 = arith.addf %10, %12 : vector<16x400xf32>
    %cst_11 = arith.constant 0.000000e+00 : f32
    %14 = vector.broadcast %cst_11 : f32 to vector<16x400xf32>
    %15 = arith.maximumf %13, %14 : vector<16x400xf32>
    %c0_12 = arith.constant 0 : index
    %c0_13 = arith.constant 0 : index
    %16 = vector.load %arg6[%c0_12, %c0_13] : memref<1x400xbf16, #tpu.memory_space<vmem>>, vector<1x400xbf16>
    %17 = arith.extf %16 : vector<1x400xbf16> to vector<1x400xf32>
    %18 = vector.broadcast %17 : vector<1x400xf32> to vector<16x400xf32>
    %19 = arith.mulf %15, %18 : vector<16x400xf32>
    %cst_14 = arith.constant dense<0.000000e+00> : vector<16xf32>
    %20 = vector.multi_reduction <add>, %19, %cst_14 [1] : vector<16x400xf32> to vector<16xf32>
    %21 = vector.shape_cast %20 : vector<16xf32> to vector<16x1xf32>
    %22 = tpu.transpose %21, [1, 0] : vector<16x1xf32> -> vector<1x16xf32>
    %c0_15 = arith.constant 0 : index
    %c0_16 = arith.constant 0 : index
    %23 = vector.load %arg7[%c0_15, %c0_16] : memref<1x1xf32, #tpu.memory_space<vmem>>, vector<1x1xf32>
    %24 = vector.broadcast %23 : vector<1x1xf32> to vector<1x16xf32>
    %25 = arith.addf %22, %24 : vector<1x16xf32>
    %c0_17 = arith.constant 0 : index
    %c0_18 = arith.constant 0 : index
    %26 = vector.load %arg8[%c0_17, %c0_18] : memref<1x16xf32, #tpu.memory_space<vmem>>, vector<1x16xf32>
    tpu.vector_store %arg8[%c0_17, %c0_18], %25 {strides = array<i32>} : memref<1x16xf32, #tpu.memory_space<vmem>>, vector<1x16xf32>,
    return
  }
  func.func @transform_0(%arg0: i32) -> (i32, i32) {
    %c0_i32 = arith.constant 0 : i32
    %c0_i32_0 = arith.constant 0 : i32
    return %arg0, %c0_i32 : i32, i32
  }
  func.func @transform_1(%arg0: i32) -> (i32, i32) {
    %c0_i32 = arith.constant 0 : i32
    %c0_i32_0 = arith.constant 0 : i32
    %c0_i32_1 = arith.constant 0 : i32
    return %c0_i32, %c0_i32_0 : i32, i32
  }
  func.func @transform_2(%arg0: i32) -> (i32, i32) {
    %c0_i32 = arith.constant 0 : i32
    %c0_i32_0 = arith.constant 0 : i32
    %c0_i32_1 = arith.constant 0 : i32
    return %c0_i32, %c0_i32_0 : i32, i32
  }
  func.func @transform_3(%arg0: i32) -> (i32, i32) {
    %c0_i32 = arith.constant 0 : i32
    %c0_i32_0 = arith.constant 0 : i32
    %c0_i32_1 = arith.constant 0 : i32
    return %c0_i32, %c0_i32_0 : i32, i32
  }
  func.func @transform_4(%arg0: i32) -> (i32, i32) {
    %c0_i32 = arith.constant 0 : i32
    %c0_i32_0 = arith.constant 0 : i32
    %c0_i32_1 = arith.constant 0 : i32
    return %c0_i32, %c0_i32_0 : i32, i32
  }
  func.func @transform_5(%arg0: i32) -> (i32, i32) {
    %c0_i32 = arith.constant 0 : i32
    %c0_i32_0 = arith.constant 0 : i32
    %c0_i32_1 = arith.constant 0 : i32
    return %c0_i32, %c0_i32_0 : i32, i32
  }
  func.func @transform_6(%arg0: i32) -> (i32, i32) {
    %c0_i32 = arith.constant 0 : i32
    %c0_i32_0 = arith.constant 0 : i32
    %c0_i32_1 = arith.constant 0 : i32
    return %c0_i32, %c0_i32_0 : i32, i32
  }
  func.func @transform_7(%arg0: i32) -> (i32, i32) {
    %c0_i32 = arith.constant 0 : i32
    %c0_i32_0 = arith.constant 0 : i32
    return %c0_i32, %arg0 : i32, i32
  }
}

</mosaic_0001>

<bundles_post_ra>
// kernel: tpu_custom_call.1
= control target key start
LH: loop header
LB: loop body
LE: loop exit
PB: predicated region body
PF: predicated region fallthrough
CT: control target
= control target key end

     0   :  { %s1695_s0 = inlined_call_operand.hbm [shape: bf16[16,16], index: 0, kind: input, shape index: {}]   ;;  %s1696_s1 = inlined_call_operand.hbm [shape: bf16[16,400], index: 1, kind: input, shape index: {}]   ;;  %s1697_s2 = inlined_call_operand.vmem [shape: f32[1,400], index: 2, kind: input, shape index: {}]   ;;  %s1698_s3 = inlined_call_operand.hbm [shape: bf16[400,400], index: 3, kind: input, shape index: {}]   ;;  %s1699_s4 = inlined_call_operand.vmem [shape: f32[1,400], index: 4, kind: input, shape index: {}]   ;;  %s1700_s5 = inlined_call_operand.vmem [shape: bf16[1,400], index: 5, kind: input, shape index: {}]   ;;  %s1701_s6 = inlined_call_operand.<no memory space> [shape: f32[1,1], index: 6, kind: input, shape index: {}]   ;;  %s1702_s7 = inlined_call_operand.hbm [shape: f32[1,16], index: 7, kind: output, shape index: {}]  }
   0x1   :  { %v12_v0 = vstv %s1701_s6 }
   0x2   :  { %13 = vst [vmem:[#allocation2] sm:$0x1] %v12_v0 }
   0x3   :  { %14 = vsyncpa [#allocation4], 0 }
   0x4   :  { %15 = vsyncpa [#allocation7], 0 }
   0x5   :  { %16 = vsyncpa [#allocation5], 0  ;;  %s1539_s26 = smov [#allocation6]   ;;  %s1445_s30 = scalar_lea.hbm %s1696_s1, 512 }
   0x6   :  { %s34_s27 = sshll.u32 %s1539_s26, 4  ;;  %p1446_p0 = scmp.ne.s32.totalorder %s1696_s1, %s1445_s30  ;;  %s35_s27 = int_to_ptr.vmem [resolvable:$true] %s34_s27 }
   0x7   :  { %p1449_p1 = scmp.lt.u32.totalorder %s1445_s30, %s1696_s1 }
   0x9   :  { %p1451_p2 = pnand %p1449_p1, %p1446_p0 }
   0xb   :  { %1454 = shalt.err (!%p1451_p2)
}
   0xc   :  { %s1455_s6 = scalar_lea.vmem %s35_s27, 512  ;;  %p1460_p4 = scmp.lt.s32.totalorder %s35_s27, %s35_s27 }
   0xd   :  { %p1456_p3 = scmp.ne.s32.totalorder %s35_s27, %s1455_s6  ;;  %p1461_p5 = scmp.lt.s32.totalorder %s1455_s6, %s1455_s6 }
   0xf   :  { %p1462_p6 = por %p1461_p5, %p1460_p4 }
  0x11   :  { %p1463_p7 = pnand %p1462_p6, %p1456_p3 }
  0x13   :  { %1466 = shalt.err (!%p1463_p7)
}
  0x14   :  { %s1540_s12 = smov 256   ;;  %s1541_s13 = smov 16  }
  0x15   :  { %40 = dma.hbm_to_vmem [thread:$0]  %s1696_s1, 512, %s35_s27, [#allocation7], %s1540_s12, %s1540_s12, %s1541_s13  }
  0x16   :  { %s1542_s16 = smov [#allocation3]   ;;  %s1467_s20 = scalar_lea.hbm %s1695_s0, 128 }
  0x17   :  { %s22_s17 = sshll.u32 %s1542_s16, 4  ;;  %p1468_p8 = scmp.ne.s32.totalorder %s1695_s0, %s1467_s20  ;;  %s23_s17 = int_to_ptr.vmem [resolvable:$true] %s22_s17 }
  0x18   :  { %p1471_p9 = scmp.lt.u32.totalorder %s1467_s20, %s1695_s0 }
  0x1a   :  { %p1473_p10 = pnand %p1471_p9, %p1468_p8 }
  0x1c   :  { %1476 = shalt.err (!%p1473_p10)
}
  0x1d   :  { %s1477_s25 = scalar_lea.vmem %s23_s17, 128  ;;  %p1482_p12 = scmp.lt.s32.totalorder %s23_s17, %s23_s17 }
  0x1e   :  { %p1478_p11 = scmp.ne.s32.totalorder %s23_s17, %s1477_s25  ;;  %p1483_p13 = scmp.lt.s32.totalorder %s1477_s25, %s1477_s25 }
  0x20   :  { %p1484_p0 = por %p1483_p13, %p1482_p12 }
  0x22   :  { %p1485_p1 = pnand %p1484_p0, %p1478_p11 }
  0x24   :  { %1488 = shalt.err (!%p1485_p1)
}
  0x25   :  { %s1543_s1 = smov 64   ;;  %s1544_s26 = smov 4  }
  0x26   :  { %28 = dma.hbm_to_vmem [thread:$0]  %s1695_s0, 128, %s23_s17, [#allocation4], %s1543_s1, %s1543_s1, %s1544_s26  }
  0x27   :  { %s1545_s29 = smov [#allocation8]   ;;  %s1489_s10 = scalar_lea.hbm %s1698_s3, 12800 }
  0x28   :  { %s48_s30 = sshll.u32 %s1545_s29, 4  ;;  %p1490_p2 = scmp.ne.s32.totalorder %s1698_s3, %s1489_s10  ;;  %s49_s30 = int_to_ptr.vmem [resolvable:$true] %s48_s30 }
  0x29   :  { %p1493_p3 = scmp.lt.u32.totalorder %s1489_s10, %s1698_s3 }
  0x2b   :  { %p1495_p4 = pnand %p1493_p3, %p1490_p2 }
  0x2d   :  { %1498 = shalt.err (!%p1495_p4)
}
  0x2e   :  { %s1499_s16 = scalar_lea.vmem %s49_s30, 12800  ;;  %p1504_p6 = scmp.lt.s32.totalorder %s49_s30, %s49_s30 }
  0x2f   :  { %p1500_p5 = scmp.ne.s32.totalorder %s49_s30, %s1499_s16  ;;  %p1505_p7 = scmp.lt.s32.totalorder %s1499_s16, %s1499_s16 }
  0x31   :  { %p1506_p8 = por %p1505_p7, %p1504_p6 }
  0x33   :  { %p1507_p9 = pnand %p1506_p8, %p1500_p5 }
  0x35   :  { %1510 = shalt.err (!%p1507_p9)
}
  0x36   :  { %54 = dma.hbm_to_vmem [thread:$0]  %s1698_s3, 12800, %s49_s30, [#allocation7], %s1540_s12, %s1540_s12, %s1541_s13  }
  0x37   :  { %1533 = dma.done.wait [#allocation4], 128  }
  0x38   :  { %1534 = vsyncadd [#allocation4], 4294967168 }
  0x39   :  { %1535 = dma.done.wait [#allocation7], 13312  }
  0x3a   :  { %1536 = vsyncadd [#allocation7], 4294953984  ;;  %v1546_v1 = vmov 0   ;;  %v1288_v2 = vld [vmem:[#allocation6 + $0x4] ss:$16 sps:$4 sm:$0xff]   ;;  %v1291_v4 = vld [vmem:[#allocation3] sm:$0xff]  }
  0x3b   :  { %160 = vmatprep.mubr.bf16.mxu0 %v1546_v1  ;;  %203 = vmatprep.mubr.bf16.mxu1 %v1546_v1  ;;  %v1290_v3 = vld [vmem:[#allocation6] ss:$16 sps:$4 sm:$0xff]   ;;  %vm124_vm0 = vcmask 130048   ;;  %v1292_v5 = vld [vmem:[#allocation6 + $0xc] ss:$16 sps:$4 sm:$0xff]   ;;  %vm1133_vm1 = vcmask 122880  }
  0x3c   :  { %1286 = vset.pattern.permute.xlu1 %v1546_v1  ;;  %1287 = vset.pattern.permute.xlu0 %v1546_v1  ;;  %v1294_v6 = vld [vmem:[#allocation6 + $0x8] ss:$16 sps:$4 sm:$0xff]   ;;  %v1295_v7 = vld [vmem:[#allocation8] ss:$16 sps:$4 sm:$0xff]   ;;  %v1297_v8 = vld [vmem:[#allocation8 + $0x4] ss:$16 sps:$4 sm:$0xff]  }
  0x3d   :  { %128 = vmatprep.subr.bf16.mxu0 %v1288_v2  ;;  %171 = vmatprep.subr.bf16.mxu1 %v1292_v5  ;;  %v1298_v9 = vld [vmem:[#allocation8 + $0x8] ss:$16 sps:$4 sm:$0xff]   ;;  %v1300_v10 = vld [vmem:[#allocation8 + $0xc] ss:$16 sps:$4 sm:$0xff]   ;;  %v1303_v11 = vld [vmem:[#allocation8 + $0x24] ss:$16 sps:$4 sm:$0xff]  }
  0x3e   :  { %129 = vmatpush1.bf16.msra.mxu0 %v1290_v3  ;;  %172 = vmatpush1.bf16.msra.mxu1 %v1294_v6  ;;  %v1301_v12 = vld [vmem:[#allocation8 + $0x20] ss:$16 sps:$4 sm:$0xff]   ;;  %v1306_v13 = vld [vmem:[#allocation8 + $0x2c] ss:$16 sps:$4 sm:$0xff]   ;;  %v1304_v14 = vld [vmem:[#allocation8 + $0x28] ss:$16 sps:$4 sm:$0xff]  }
  0x3f   :  { %851 = vmatprep.subr.bf16.mxu0 %v1297_v8  ;;  %937 = vmatprep.subr.bf16.mxu1 %v1300_v10  ;;  %v1309_v15 = vld [vmem:[#allocation8 + $0x44] ss:$16 sps:$4 sm:$0xff]   ;;  %v1312_v16 = vld [vmem:[#allocation8 + $0x4c] ss:$16 sps:$4 sm:$0xff]   ;;  %v1307_v17 = vld [vmem:[#allocation8 + $0x40] ss:$16 sps:$4 sm:$0xff]  }
  0x40   :  { %v1315_v18 = vld [vmem:[#allocation8 + $0x64] ss:$16 sps:$4 sm:$0xff]   ;;  %v1310_v19 = vld [vmem:[#allocation8 + $0x48] ss:$16 sps:$4 sm:$0xff]   ;;  %v1318_v20 = vld [vmem:[#allocation8 + $0x6c] ss:$16 sps:$4 sm:$0xff]  }
  0x41   :  { %1156 = vmatmul.mubr.msk.bf16.vlgmr.msra.gmra.mrb[0].mxu0 %vm124_vm0, %v1291_v4  ;;  %1157 = vmatmul.mubr.msk.bf16.vlgmr.msra.gmra.mrb[0].mxu1 %vm124_vm0, %v1291_v4  ;;  %v1313_v21 = vld [vmem:[#allocation8 + $0x60] ss:$16 sps:$4 sm:$0xff]   ;;  %v1321_v22 = vld [vmem:[#allocation8 + $0x84] ss:$16 sps:$4 sm:$0xff]   ;;  %v1316_v23 = vld [vmem:[#allocation8 + $0x68] ss:$16 sps:$4 sm:$0xff]  }
  0x42   :  { %852 = vmatpush1.bf16.msra.mxu0 %v1295_v7  ;;  %938 = vmatpush1.bf16.msra.mxu1 %v1298_v9  ;;  %v1324_v24 = vld [vmem:[#allocation8 + $0x8c] ss:$16 sps:$4 sm:$0xff]   ;;  %v1319_v25 = vld [vmem:[#allocation8 + $0x80] ss:$16 sps:$4 sm:$0xff]   ;;  %v1327_v26 = vld [vmem:[#allocation8 + $0xa4] ss:$16 sps:$4 sm:$0xff]   ;;  %v79_v9 = vlaneseq }
  0x43   :  { %853 = vmatprep.subr.bf16.mxu0 %v1303_v11  ;;  %939 = vmatprep.subr.bf16.mxu1 %v1306_v13  ;;  %v1322_v27 = vld [vmem:[#allocation8 + $0x88] ss:$16 sps:$4 sm:$0xff]   ;;  %v1330_v28 = vld [vmem:[#allocation8 + $0xac] ss:$16 sps:$4 sm:$0xff]   ;;  %v1325_v29 = vld [vmem:[#allocation8 + $0xa0] ss:$16 sps:$4 sm:$0xff]  }
  0x44   :  { %v1333_v30 = vld [vmem:[#allocation8 + $0xc4] ss:$16 sps:$4 sm:$0xff]   ;;  %v1328_v31 = vld [vmem:[#allocation8 + $0xa8] ss:$16 sps:$4 sm:$0xff]   ;;  %v1336_v32 = vld [vmem:[#allocation8 + $0xcc] ss:$16 sps:$4 sm:$0xff]  }
  0x45   :  { %v1331_v33 = vld [vmem:[#allocation8 + $0xc0] ss:$16 sps:$4 sm:$0xff]   ;;  %v1339_v34 = vld [vmem:[#allocation8 + $0xe4] ss:$16 sps:$4 sm:$0xff]   ;;  %v1334_v35 = vld [vmem:[#allocation8 + $0xc8] ss:$16 sps:$4 sm:$0xff]  }
  0x46   :  { %854 = vmatpush1.bf16.msra.mxu0 %v1301_v12  ;;  %940 = vmatpush1.bf16.msra.mxu1 %v1304_v14  ;;  %v1342_v36 = vld [vmem:[#allocation8 + $0xec] ss:$16 sps:$4 sm:$0xff]   ;;  %v1337_v37 = vld [vmem:[#allocation8 + $0xe0] ss:$16 sps:$4 sm:$0xff]   ;;  %v1345_v38 = vld [vmem:[#allocation8 + $0x104] ss:$16 sps:$4 sm:$0xff]  }
  0x47   :  { %855 = vmatprep.subr.bf16.mxu0 %v1309_v15  ;;  %941 = vmatprep.subr.bf16.mxu1 %v1312_v16  ;;  %v1340_v39 = vld [vmem:[#allocation8 + $0xe8] ss:$16 sps:$4 sm:$0xff]   ;;  %v1348_v40 = vld [vmem:[#allocation8 + $0x10c] ss:$16 sps:$4 sm:$0xff]   ;;  %v1343_v41 = vld [vmem:[#allocation8 + $0x100] ss:$16 sps:$4 sm:$0xff]  }
  0x48   :  { %v1351_v42 = vld [vmem:[#allocation8 + $0x124] ss:$16 sps:$4 sm:$0xff]   ;;  %v1346_v43 = vld [vmem:[#allocation8 + $0x108] ss:$16 sps:$4 sm:$0xff]   ;;  %v1349_v44 = vld [vmem:[#allocation8 + $0x120] ss:$16 sps:$4 sm:$0xff]  }
  0x49   :  { %v1354_v45 = vld [vmem:[#allocation8 + $0x12c] ss:$16 sps:$4 sm:$0xff]   ;;  %v1352_v46 = vld [vmem:[#allocation8 + $0x128] ss:$16 sps:$4 sm:$0xff]   ;;  %v1357_v47 = vld [vmem:[#allocation8 + $0x144] ss:$16 sps:$4 sm:$0xff]  }
  0x4a   :  { %856 = vmatpush1.bf16.msra.mxu0 %v1307_v17  ;;  %942 = vmatpush1.bf16.msra.mxu1 %v1310_v19  ;;  %v1360_v48 = vld [vmem:[#allocation8 + $0x14c] ss:$16 sps:$4 sm:$0xff]   ;;  %v1355_v49 = vld [vmem:[#allocation8 + $0x140] ss:$16 sps:$4 sm:$0xff]   ;;  %v1363_v50 = vld [vmem:[#allocation8 + $0x164] ss:$16 sps:$4 sm:$0xff]  }
  0x4b   :  { %857 = vmatprep.subr.bf16.mxu0 %v1315_v18  ;;  %943 = vmatprep.subr.bf16.mxu1 %v1318_v20  ;;  %v1358_v51 = vld [vmem:[#allocation8 + $0x148] ss:$16 sps:$4 sm:$0xff]   ;;  %v1366_v52 = vld [vmem:[#allocation8 + $0x16c] ss:$16 sps:$4 sm:$0xff]   ;;  %v1361_v53 = vld [vmem:[#allocation8 + $0x160] ss:$16 sps:$4 sm:$0xff]  }
  0x4c   :  { %v1369_v54 = vld [vmem:[#allocation8 + $0x184] ss:$16 sps:$4 sm:$0xff]   ;;  %v1364_v55 = vld [vmem:[#allocation8 + $0x168] ss:$16 sps:$4 sm:$0xff]   ;;  %v1372_v56 = vld [vmem:[#allocation8 + $0x18c] ss:$16 sps:$4 sm:$0xff]  }
  0x4d   :  { %v1367_v57 = vld [vmem:[#allocation8 + $0x180] ss:$16 sps:$4 sm:$0xff]   ;;  %v1375_v58 = vld [vmem:[#allocation8 + $0x1a4] ss:$16 sps:$4 sm:$0xff]   ;;  %v1370_v59 = vld [vmem:[#allocation8 + $0x188] ss:$16 sps:$4 sm:$0xff]  }
  0x4e   :  { %858 = vmatpush1.bf16.msra.mxu0 %v1313_v21  ;;  %944 = vmatpush1.bf16.msra.mxu1 %v1316_v23  ;;  %v1378_v60 = vld [vmem:[#allocation8 + $0x1ac] ss:$16 sps:$4 sm:$0xff]   ;;  %v1373_v61 = vld [vmem:[#allocation8 + $0x1a0] ss:$16 sps:$4 sm:$0xff]   ;;  %v1376_v62 = vld [vmem:[#allocation8 + $0x1a8] ss:$16 sps:$4 sm:$0xff]  }
  0x4f   :  { %859 = vmatprep.subr.bf16.mxu0 %v1321_v22  ;;  %945 = vmatprep.subr.bf16.mxu1 %v1324_v24  ;;  %v1381_v63 = vld [vmem:[#allocation8 + $0x1c4] ss:$16 sps:$4 sm:$0xff]   ;;  %v1384_v0 = vld [vmem:[#allocation8 + $0x1cc] ss:$16 sps:$4 sm:$0xff]   ;;  %v1379_v1 = vld [vmem:[#allocation8 + $0x1c0] ss:$16 sps:$4 sm:$0xff]  }
  0x50   :  { %v1382_v2 = vld [vmem:[#allocation8 + $0x1c8] ss:$16 sps:$4 sm:$0xff]   ;;  %v1387_v3 = vld [vmem:[#allocation8 + $0x1e4] ss:$16 sps:$4 sm:$0xff]   ;;  %v1390_v4 = vld [vmem:[#allocation8 + $0x1ec] ss:$16 sps:$4 sm:$0xff]  }
  0x51   :  { %v1385_v5 = vld [vmem:[#allocation8 + $0x1e0] ss:$16 sps:$4 sm:$0xff]   ;;  %v1388_v6 = vld [vmem:[#allocation8 + $0x1e8] ss:$16 sps:$4 sm:$0xff]   ;;  %v1393_v7 = vld [vmem:[#allocation8 + $0x204] ss:$16 sps:$4 sm:$0xff]  }
  0x52   :  { %860 = vmatpush1.bf16.msra.mxu0 %v1319_v25  ;;  %946 = vmatpush1.bf16.msra.mxu1 %v1322_v27  ;;  %v1396_v8 = vld [vmem:[#allocation8 + $0x20c] ss:$16 sps:$4 sm:$0xff]   ;;  %v1635_v10 = vshrl.u32 %v79_v9, 7  ;;  %v77_v12 = vld [vmem:[%s1697_s2] sm:$0xf] }
  0x53   :  { %861 = vmatprep.subr.bf16.mxu0 %v1327_v26  ;;  %947 = vmatprep.subr.bf16.mxu1 %v1330_v28  ;;  %v1430_v9 = vld [vmem:[#allocation8 + $0x2c8] ss:$16 sps:$4 sm:$0xff]  }
  0x54   :  { %v1638_v11 = vsub.s32 0, %v1635_v10  ;;  %v85_v13 = vsub.s32 1, %v1635_v10  ;;  %v1645_v14 = vsub.s32 2, %v1635_v10  ;;  %v93_v16 = vsub.s32 3, %v1635_v10 }
  0x56   :  { %862 = vmatpush1.bf16.msra.mxu0 %v1325_v29  ;;  %948 = vmatpush1.bf16.msra.mxu1 %v1328_v31  ;;  %v82_v15 = vrot.slane %v77_v12, %v1638_v11  ;;  %v86_v17 = vrot.slane %v77_v12, %v85_v13  ;;  %v90_v19 = vrot.slane %v77_v12, %v1645_v14 }
  0x57   :  { %863 = vmatprep.subr.bf16.mxu0 %v1333_v30  ;;  %949 = vmatprep.subr.bf16.mxu1 %v1336_v32  ;;  %v94_v22 = vrot.slane %v77_v12, %v93_v16  ;;  %v1435_v12 = vld [vmem:[#allocation8 + $0x2e4] ss:$16 sps:$4 sm:$0xff]  }
  0x5a   :  { %864 = vmatpush1.bf16.msra.mxu0 %v1331_v33  ;;  %950 = vmatpush1.bf16.msra.mxu1 %v1334_v35 }
  0x5b   :  { %865 = vmatprep.subr.bf16.mxu0 %v1339_v34  ;;  %951 = vmatprep.subr.bf16.mxu1 %v1342_v36 }
  0x5e   :  { %866 = vmatpush1.bf16.msra.mxu0 %v1337_v37  ;;  %952 = vmatpush1.bf16.msra.mxu1 %v1340_v39 }
  0x5f   :  { %867 = vmatprep.subr.bf16.mxu0 %v1345_v38  ;;  %953 = vmatprep.subr.bf16.mxu1 %v1348_v40 }
  0x62   :  { %868 = vmatpush1.bf16.msra.mxu0 %v1343_v41  ;;  %954 = vmatpush1.bf16.msra.mxu1 %v1346_v43 }
  0x63   :  { %869 = vmatprep.subr.bf16.mxu0 %v1351_v42  ;;  %955 = vmatprep.subr.bf16.mxu1 %v1354_v45  ;;  %v1394_v45 = vld [vmem:[#allocation8 + $0x208] ss:$16 sps:$4 sm:$0xff]  }
  0x66   :  { %870 = vmatpush1.bf16.msra.mxu0 %v1349_v44  ;;  %956 = vmatpush1.bf16.msra.mxu1 %v1352_v46  ;;  %v1391_v44 = vld [vmem:[#allocation8 + $0x200] ss:$16 sps:$4 sm:$0xff]  }
  0x67   :  { %871 = vmatprep.subr.bf16.mxu0 %v1357_v47  ;;  %957 = vmatprep.subr.bf16.mxu1 %v1360_v48  ;;  %v1399_v47 = vld [vmem:[#allocation8 + $0x224] ss:$16 sps:$4 sm:$0xff]   ;;  %v1402_v48 = vld [vmem:[#allocation8 + $0x22c] ss:$16 sps:$4 sm:$0xff]  }
  0x6a   :  { %872 = vmatpush1.bf16.msra.mxu0 %v1355_v49  ;;  %958 = vmatpush1.bf16.msra.mxu1 %v1358_v51 }
  0x6b   :  { %873 = vmatprep.subr.bf16.mxu0 %v1363_v50  ;;  %959 = vmatprep.subr.bf16.mxu1 %v1366_v52  ;;  %v1397_v52 = vld [vmem:[#allocation8 + $0x220] ss:$16 sps:$4 sm:$0xff]  }
  0x6e   :  { %874 = vmatpush1.bf16.msra.mxu0 %v1361_v53  ;;  %960 = vmatpush1.bf16.msra.mxu1 %v1364_v55  ;;  %v1400_v53 = vld [vmem:[#allocation8 + $0x228] ss:$16 sps:$4 sm:$0xff]   ;;  %v1408_v55 = vld [vmem:[#allocation8 + $0x24c] ss:$16 sps:$4 sm:$0xff]  }
  0x6f   :  { %875 = vmatprep.subr.bf16.mxu0 %v1369_v54  ;;  %961 = vmatprep.subr.bf16.mxu1 %v1372_v56  ;;  %v1405_v54 = vld [vmem:[#allocation8 + $0x244] ss:$16 sps:$4 sm:$0xff]   ;;  %v1403_v56 = vld [vmem:[#allocation8 + $0x240] ss:$16 sps:$4 sm:$0xff]  }
  0x72   :  { %876 = vmatpush1.bf16.msra.mxu0 %v1367_v57  ;;  %962 = vmatpush1.bf16.msra.mxu1 %v1370_v59  ;;  %v1406_v57 = vld [vmem:[#allocation8 + $0x248] ss:$16 sps:$4 sm:$0xff]   ;;  %v1414_v59 = vld [vmem:[#allocation8 + $0x26c] ss:$16 sps:$4 sm:$0xff]  }
  0x73   :  { %877 = vmatprep.subr.bf16.mxu0 %v1375_v58  ;;  %963 = vmatprep.subr.bf16.mxu1 %v1378_v60  ;;  %v1411_v58 = vld [vmem:[#allocation8 + $0x264] ss:$16 sps:$4 sm:$0xff]   ;;  %v1409_v60 = vld [vmem:[#allocation8 + $0x260] ss:$16 sps:$4 sm:$0xff]  }
  0x76   :  { %878 = vmatpush1.bf16.msra.mxu0 %v1373_v61  ;;  %964 = vmatpush1.bf16.msra.mxu1 %v1376_v62  ;;  %v1412_v61 = vld [vmem:[#allocation8 + $0x268] ss:$16 sps:$4 sm:$0xff]   ;;  %v1417_v62 = vld [vmem:[#allocation8 + $0x284] ss:$16 sps:$4 sm:$0xff]  }
  0x77   :  { %879 = vmatprep.subr.bf16.mxu0 %v1381_v63  ;;  %965 = vmatprep.subr.bf16.mxu1 %v1384_v0  ;;  %v1420_v63 = vld [vmem:[#allocation8 + $0x28c] ss:$16 sps:$4 sm:$0xff]   ;;  %v1415_v0 = vld [vmem:[#allocation8 + $0x280] ss:$16 sps:$4 sm:$0xff]  }
  0x7a   :  { %880 = vmatpush1.bf16.msra.mxu0 %v1379_v1  ;;  %966 = vmatpush1.bf16.msra.mxu1 %v1382_v2  ;;  %v1418_v1 = vld [vmem:[#allocation8 + $0x288] ss:$16 sps:$4 sm:$0xff]   ;;  %v1423_v2 = vld [vmem:[#allocation8 + $0x2a4] ss:$16 sps:$4 sm:$0xff]  }
  0x7b   :  { %881 = vmatprep.subr.bf16.mxu0 %v1387_v3  ;;  %967 = vmatprep.subr.bf16.mxu1 %v1390_v4  ;;  %v1426_v3 = vld [vmem:[#allocation8 + $0x2ac] ss:$16 sps:$4 sm:$0xff]   ;;  %v1421_v4 = vld [vmem:[#allocation8 + $0x2a0] ss:$16 sps:$4 sm:$0xff]  }
  0x7e   :  { %882 = vmatpush1.bf16.msra.mxu0 %v1385_v5  ;;  %968 = vmatpush1.bf16.msra.mxu1 %v1388_v6  ;;  %v1424_v5 = vld [vmem:[#allocation8 + $0x2a8] ss:$16 sps:$4 sm:$0xff]   ;;  %v1429_v6 = vld [vmem:[#allocation8 + $0x2c4] ss:$16 sps:$4 sm:$0xff]  }
  0x7f   :  { %894 = vmatprep.subr.bf16.mxu0 %v1393_v7  ;;  %980 = vmatprep.subr.bf16.mxu1 %v1396_v8  ;;  %v1432_v7 = vld [vmem:[#allocation8 + $0x2cc] ss:$16 sps:$4 sm:$0xff]   ;;  %v1427_v8 = vld [vmem:[#allocation8 + $0x2c0] ss:$16 sps:$4 sm:$0xff]  }
 0x114   :  { %v162_v18 = vpop.f32.mrb[0].mxu0  ;;  %v205_v27 = vpop.f32.mrb[0].mxu1 }
 0x115   :  { %v163_v20 = vadd.f32 %v162_v18, %v82_v15  ;;  %v164_v21 = vpop.f32.mrb[1].mxu0  ;;  %v206_v29 = vadd.f32 %v205_v27, %v90_v19  ;;  %v207_v30 = vpop.f32.mrb[1].mxu1  ;;  %v1436_v18 = vld [vmem:[#allocation8 + $0x2e8] ss:$16 sps:$4 sm:$0xff]  }
 0x116   :  { %v165_v23 = vadd.f32 %v164_v21, %v86_v17  ;;  %v166_v24 = vpop.f32.mrb[2].mxu0  ;;  %v208_v33 = vadd.f32 %v207_v30, %v94_v22  ;;  %v209_v34 = vpop.f32.mrb[2].mxu1  ;;  %v1439_v21 = vld [vmem:[#allocation8 + $0x300] ss:$16 sps:$4 sm:$0xff]   ;;  %v326_v27 = vld [vmem:[%s1699_s4] sm:$0xf] }
 0x117   :  { %v167_v25 = vadd.f32 %v166_v24, %v82_v15  ;;  %v168_v26 = vpop.f32.mrb[3].mxu0  ;;  %v214_v31 = vmax.f32 %v163_v20, 0.0  ;;  %v216_v37 = vmax.f32 %v206_v29, 0.0  ;;  %v210_v38 = vadd.f32 %v209_v34, %v90_v19  ;;  %v211_v39 = vpop.f32.mrb[3].mxu1  ;;  %v1438_v15 = vld [vmem:[#allocation8 + $0x2ec] ss:$16 sps:$4 sm:$0xff]  }
 0x118   :  { %v169_v28 = vadd.f32 %v168_v26, %v86_v17  ;;  %v215_v35 = vmax.f32 %v165_v23, 0.0  ;;  %v217_v41 = vmax.f32 %v208_v33, 0.0  ;;  %v212_v42 = vadd.f32 %v211_v39, %v94_v22  ;;  %v1433_v17 = vld [vmem:[#allocation8 + $0x2e0] ss:$16 sps:$4 sm:$0xff]   ;;  %v1441_v19 = vld [vmem:[#allocation8 + $0x304] ss:$16 sps:$4 sm:$0xff]  }
 0x119   :  { %v218_v32 = vmax.f32 %v167_v25, 0.0  ;;  %v220_v46 = vmax.f32 %v210_v38, 0.0  ;;  %v1444_v20 = vld [vmem:[#allocation8 + $0x30c] ss:$16 sps:$4 sm:$0xff]   ;;  %v1442_v22 = vld [vmem:[#allocation8 + $0x308] ss:$16 sps:$4 sm:$0xff]   ;;  %v331_v29 = vrot.slane %v326_v27, %v1638_v11  ;;  %v335_v33 = vrot.slane %v326_v27, %v85_v13 }
 0x11a   :  { %v219_v36 = vmax.f32 %v169_v28, 0.0  ;;  %v221_v49 = vmax.f32 %v212_v42, 0.0  ;;  %v1122_v23 = vld [vmem:[#allocation2] sm:$0x1]  ;;  %v1044_v26 = vsub.s32 4, %v1635_v10  ;;  %v1048_v28 = vsub.s32 6, %v1635_v10 }
 0x11b   :  { %v222_v40 = vpack.c.bf16 %v218_v32, %v214_v31  ;;  %v1654_v50 = vpack.c.bf16 %v220_v46, %v216_v37  ;;  %1125 = vperm.xlu1 %1286, %v1122_v23   ;;  %v1031_v24 = vld [vmem:[%s1700_s5] sm:$0xf]  ;;  %v339_v31 = vrot.slane %v326_v27, %v1645_v14  ;;  %s1547_s4 = smov [#allocation9]  }
 0x11c   :  { %v223_v43 = vpack.c.bf16 %v219_v36, %v215_v35  ;;  %v225_v51 = vpack.c.bf16 %v221_v49, %v217_v41  ;;  %v1032_v25 = vunpack.c.l.bf16 %v1031_v24  ;;  %v343_v35 = vrot.slane %v326_v27, %v93_v16  ;;  %s1141_s5 = sshll.u32 %s1547_s4, 4  ;;  %s1142_s5 = int_to_ptr.vmem [resolvable:$true] %s1141_s5 }
 0x11d   :  { %s1511_s20 = scalar_lea.vmem %s1142_s5, 16  ;;  %s1515_s21 = scalar_lea.vmem %s1142_s5, 32 }
 0x11e   :  { %883 = vmatprep.mubr.bf16.mxu0 %v223_v43  ;;  %969 = vmatprep.mubr.bf16.mxu1 %v223_v43  ;;  %v1037_v30 = vrot.slane %v1032_v25, %v1638_v11  ;;  %v1045_v32 = vrot.slane %v1032_v25, %v1044_v26  ;;  %v1041_v34 = vrot.slane %v1032_v25, %v1645_v14  ;;  %p1512_p10 = scmp.ne.s32.totalorder %s1142_s5, %s1511_s20  ;;  %p1516_p11 = scmp.lt.s32.totalorder %s1142_s5, %s1142_s5 }
 0x11f   :  { %884 = vmatmul.mubr.bf16.vlgmr.msra.gmra.mrb[4].mxu0 %v222_v40  ;;  %970 = vmatmul.mubr.bf16.vlgmr.msra.gmra.mrb[4].mxu1 %v222_v40  ;;  %v1049_v36 = vrot.slane %v1032_v25, %v1048_v28  ;;  %p1517_p12 = scmp.lt.s32.totalorder %s1515_s21, %s1511_s20 }
 0x120   :  { %895 = vmatpush1.bf16.msra.mxu0 %v1391_v44  ;;  %981 = vmatpush1.bf16.msra.mxu1 %v1394_v45  ;;  %v1057_v40 = vrot.slane %v1037_v30, %v1638_v11  ;;  %v1065_v42 = vrot.slane %v1045_v32, %v1638_v11  ;;  %v1061_v46 = vrot.slane %v1041_v34, %v1638_v11 }
 0x121   :  { %896 = vmatprep.subr.bf16.mxu0 %v1399_v47  ;;  %982 = vmatprep.subr.bf16.mxu1 %v1402_v48  ;;  %v1069_v10 = vrot.slane %v1049_v36, %v1638_v11  ;;  %p1518_p13 = por %p1517_p12, %p1516_p11 }
 0x122   :  { %1258 = vmatprep.mubr.msk.bf16.mxu0 %vm124_vm0, %v225_v51  ;;  %1259 = vmatprep.mubr.msk.bf16.mxu1 %vm124_vm0, %v225_v51 }
 0x123   :  { %p1519_p0 = pnand %p1518_p13, %p1512_p10 }
 0x124   :  { %897 = vmatpush1.bf16.msra.mxu0 %v1397_v52  ;;  %983 = vmatpush1.bf16.msra.mxu1 %v1400_v53 }
 0x125   :  { %898 = vmatprep.subr.bf16.mxu0 %v1405_v54  ;;  %984 = vmatprep.subr.bf16.mxu1 %v1408_v55 }
 0x128   :  { %899 = vmatpush1.bf16.msra.mxu0 %v1403_v56  ;;  %985 = vmatpush1.bf16.msra.mxu1 %v1406_v57 }
 0x129   :  { %900 = vmatprep.subr.bf16.mxu0 %v1411_v58  ;;  %986 = vmatprep.subr.bf16.mxu1 %v1414_v59 }
 0x12c   :  { %901 = vmatpush1.bf16.msra.mxu0 %v1409_v60  ;;  %987 = vmatpush1.bf16.msra.mxu1 %v1412_v61 }
 0x12d   :  { %902 = vmatprep.subr.bf16.mxu0 %v1417_v62  ;;  %988 = vmatprep.subr.bf16.mxu1 %v1420_v63 }
 0x130   :  { %903 = vmatpush1.bf16.msra.mxu0 %v1415_v0  ;;  %989 = vmatpush1.bf16.msra.mxu1 %v1418_v1 }
 0x131   :  { %904 = vmatprep.subr.bf16.mxu0 %v1423_v2  ;;  %990 = vmatprep.subr.bf16.mxu1 %v1426_v3 }
 0x134   :  { %905 = vmatpush1.bf16.msra.mxu0 %v1421_v4  ;;  %991 = vmatpush1.bf16.msra.mxu1 %v1424_v5 }
 0x135   :  { %906 = vmatprep.subr.bf16.mxu0 %v1429_v6  ;;  %992 = vmatprep.subr.bf16.mxu1 %v1432_v7 }
 0x138   :  { %907 = vmatpush1.bf16.msra.mxu0 %v1427_v8  ;;  %993 = vmatpush1.bf16.msra.mxu1 %v1430_v9 }
 0x139   :  { %908 = vmatprep.subr.bf16.mxu0 %v1435_v12  ;;  %994 = vmatprep.subr.bf16.mxu1 %v1438_v15 }
 0x13c   :  { %909 = vmatpush1.bf16.msra.mxu0 %v1433_v17  ;;  %995 = vmatpush1.bf16.msra.mxu1 %v1436_v18 }
 0x13d   :  { %910 = vmatprep.subr.bf16.mxu0 %v1441_v19  ;;  %996 = vmatprep.subr.bf16.mxu1 %v1444_v20 }
 0x140   :  { %911 = vmatpush1.bf16.msra.mxu0 %v1439_v21  ;;  %997 = vmatpush1.bf16.msra.mxu1 %v1442_v22 }
 0x143   :  { %927 = vmatmul.mubr.bf16.vlgmr.msra.gmra.mrb[4].mxu0 %v1654_v50  ;;  %1013 = vmatmul.mubr.bf16.vlgmr.msra.gmra.mrb[4].mxu1 %v1654_v50 }
 0x19a   :  { %v1126_v20 = vpop.permute.xlu1 %1125 }
 0x19b   :  { %v1131_v21 = vrot.slane %v1126_v20, %v1638_v11 }
 0x216   :  { %v928_v37 = vpop.f32.mrb[4].mxu0  ;;  %v1014_v38 = vpop.f32.mrb[4].mxu1 }
 0x217   :  { %v1260_v39 = vadd.f32 %v928_v37, %v331_v29  ;;  %v1264_v41 = vadd.f32 %v1014_v38, %v339_v31  ;;  %v930_v43 = vpop.f32.mrb[5].mxu0  ;;  %v1016_v44 = vpop.f32.mrb[5].mxu1 }
 0x218   :  { %v1261_v45 = vadd.f32 %v930_v43, %v335_v33  ;;  %v1265_v13 = vadd.f32 %v1016_v44, %v343_v35  ;;  %v932_v47 = vpop.f32.mrb[6].mxu0  ;;  %v1018_v14 = vpop.f32.mrb[6].mxu1 }
 0x219   :  { %v1023_v16 = vmax.f32 %v1260_v39, 0.0  ;;  %v1025_v48 = vmax.f32 %v1264_v41, 0.0  ;;  %v1262_v49 = vadd.f32 %v932_v47, %v331_v29  ;;  %v1266_v50 = vadd.f32 %v1018_v14, %v339_v31  ;;  %v934_v51 = vpop.f32.mrb[7].mxu0  ;;  %v1020_v52 = vpop.f32.mrb[7].mxu1 }
 0x21a   :  { %v1024_v53 = vmax.f32 %v1261_v45, 0.0  ;;  %v1026_v54 = vmax.f32 %v1265_v13, 0.0  ;;  %v1263_v55 = vadd.f32 %v934_v51, %v335_v33  ;;  %v1267_v56 = vadd.f32 %v1020_v52, %v343_v35 }
 0x21b   :  { %v1070_v57 = vmul.f32 %v1057_v40, %v1023_v16  ;;  %v1027_v58 = vmax.f32 %v1262_v49, 0.0  ;;  %v1029_v60 = vmax.f32 %v1266_v50, 0.0  ;;  %v1072_v1 = vmul.f32 %v1065_v42, %v1025_v48 }
 0x21c   :  { %v1071_v59 = vmul.f32 %v1061_v46, %v1024_v53  ;;  %v1028_v61 = vmax.f32 %v1263_v55, 0.0  ;;  %v1030_v62 = vmax.f32 %v1267_v56, 0.0  ;;  %v1073_v0 = vmul.f32 %v1069_v10, %v1026_v54 }
 0x21d   :  { %v1074_v63 = vmul.f32 %v1057_v40, %v1027_v58  ;;  %v1076_v5 = vmul.f32 %v1065_v42, %v1029_v60 }
 0x21e   :  { %v1075_v2 = vmul.f32 %v1061_v46, %v1028_v61  ;;  %v1078_v3 = vadd.f32 %v1071_v59, %v1070_v57  ;;  %v1077_v4 = vmul.f32 %v1069_v10, %v1030_v62  ;;  %v1080_v8 = vsel %vm124_vm0, %v1073_v0, 0.0 }
 0x220   :  { %v1084_v6 = vadd.f32 %v1075_v2, %v1074_v63  ;;  %v1079_v7 = vadd.f32 %v1078_v3, %v1072_v1  ;;  %v1086_v15 = vsel %vm124_vm0, %v1077_v4, 0.0 }
 0x222   :  { %v1081_v9 = vadd.f32 %v1080_v8, %v1079_v7  ;;  %v1085_v12 = vadd.f32 %v1084_v6, %v1076_v5 }
 0x224   :  { %1082 = vadd.xlane.f32.xlu0 %v1081_v9  ;;  %v1087_v17 = vadd.f32 %v1086_v15, %v1085_v12 }
 0x228   :  { %1088 = vadd.xlane.f32.xlu0 %v1087_v17 }
 0x2b1   :  { %v1083_v18 = vpop.xlane.xlu0 %1082 }
 0x2b2   :  { %1090 = vxpose.xlu1.b32.start [1/2] (short) (narrow) %v1083_v18, 8 }
 0x2b5   :  { %v1089_v19 = vpop.xlane.xlu0 %1088 }
 0x2b6   :  { %1091 = vxpose.xlu1.b32.end [2/2] (short) (narrow) %v1089_v19, 8 }
 0x332   :  { %v1106_v22 = vpop.trf.xlu1 }
 0x333   :  { %v1132_v23 = vadd.f32 %v1131_v21, %v1106_v22 }
 0x335   :  { %1134 = vst.msk [vmem:[#allocation9] sm:$0x1] %vm1133_vm1, %v1132_v23 }
 0x336   :  { %1522 = shalt.err (!%p1519_p0)
}
 0x337   :  { %s1523_s24 = scalar_lea.hbm %s1702_s7, 16 }
 0x338   :  { %p1524_p1 = scmp.ne.s32.totalorder %s1702_s7, %s1523_s24  ;;  %p1527_p2 = scmp.lt.u32.totalorder %s1523_s24, %s1702_s7 }
 0x33a   :  { %p1529_p3 = pnand %p1527_p2, %p1524_p1 }
 0x33c   :  { %1532 = shalt.err (!%p1529_p3)
}
 0x33d   :  { %1144 = dma.vmem_to_hbm [thread:$0]  %s1142_s5, 16, %s1702_s7, [#allocation5]  }
 0x33e   :  { %1537 = dma.done.wait [#allocation5], 16  }
 0x33f   :  { %1538 = vsyncadd [#allocation5], 4294967280 }
 0x340   :  { %1148 = vsyncpa [#allocation4], 1 }
 0x341   :  { %1149 = vsyncpa [#allocation7], 1 }
 0x342   :  { %1150 = vsyncpa [#allocation5], 1 }

</bundles_post_ra>
